<compile_context>
chip_gen: v5e
topology: v5e:2x2
jax: 0.10.0
libtpu: 0.0.40
codegen_flags: <defaults>
</compile_context>

<pallas_src>
import functools

import jax
import jax.numpy as jnp
from jax.experimental import pallas as pl
from jax.experimental.pallas import tpu as pltpu


def _round_up(x: int, m: int) -> int:
    return ((x + m - 1) // m) * m


def _sublane_multiple(dtype) -> int:
    # Packed-tile sublane requirement: (8,128) f32, (16,128) bf16, (32,128) 8-bit.
    itemsize = jnp.dtype(dtype).itemsize
    return max(8, 32 // itemsize)


# --------------------------------------------------------------------------- #
# Kernels
# --------------------------------------------------------------------------- #
def _matmul_block_kernel(x_ref, w_ref, o_ref):
    """Single-shot block matmul: no accumulator scratch (whole K in one step)."""
    o_ref[...] = jnp.dot(
        x_ref[...], w_ref[...], preferred_element_type=jnp.float32
    ).astype(o_ref.dtype)


def _matmul_acc_kernel(x_ref, w_ref, o_ref, acc_ref):
    """K-tiled block matmul with resident f32 accumulator (no zero-init pass)."""
    k = pl.program_id(2)
    partial = jnp.dot(x_ref[...], w_ref[...], preferred_element_type=jnp.float32)

    @pl.when(k == 0)
    def _():
        acc_ref[...] = partial

    @pl.when(k > 0)
    def _():
        acc_ref[...] += partial

    @pl.when(k == pl.num_programs(2) - 1)
    def _():
        o_ref[...] = acc_ref[...].astype(o_ref.dtype)


# --------------------------------------------------------------------------- #
# Wrapper
# --------------------------------------------------------------------------- #
def perceptron_forward(
    x,
    weight,
    *,
    compute_dtype=None,
    tm: int = 256,
    tn: int = 512,
    tk: int = 1024,
    weight_resident_bytes: int = 8 * 1024 * 1024,
    vmem_limit_bytes: int = 48 * 1024 * 1024,
):
    """y = x @ weight.T (no bias); weight is (ncomms, nfeats) like nn.Linear.

    compute_dtype=None keeps the input dtype (bit-comparable to the f32 PyTorch
    module); pass jnp.bfloat16 to trade a little accuracy for bandwidth/VMEM.
    """
    batch, nfeats = x.shape
    ncomms, nfeats_w = weight.shape
    assert nfeats == nfeats_w, "weight must be (ncomms, nfeats)"

    out_dtype = x.dtype
    if compute_dtype is not None and compute_dtype != x.dtype:
        # Cast in the wrapper so the BlockSpec DMAs move the narrow dtype
        # (halves HBM traffic and VMEM footprint when tiles are re-read).
        x = x.astype(compute_dtype)
        weight = weight.astype(compute_dtype)
    in_dtype = x.dtype

    # One-time transpose to canonical (K, N) layout: the kernel then contracts
    # with a plain (TM,TK)x(TK,TN) dot — no per-K-step RHS relayout.
    w_t = weight.T  # (nfeats, ncomms)

    in_sz = jnp.dtype(in_dtype).itemsize
    out_sz = jnp.dtype(out_dtype).itemsize
    m_mult = max(_sublane_multiple(in_dtype), _sublane_multiple(out_dtype))

    # Lane (last) dims of x / w_t / out must be multiples of 128.
    k_pad = _round_up(nfeats, 128)
    n_pad_full = _round_up(ncomms, 128)

    # M tile: respect dtype packing, shrink for small batches.
    tm = max(m_mult, _round_up(min(tm, _round_up(batch, m_mult)), m_mult))
    m_pad = _round_up(batch, tm)

    # ------------------------------------------------------------------ #
    # Path selection: whole-weight-resident vs. fully tiled.
    # ------------------------------------------------------------------ #
    w_bytes = k_pad * n_pad_full * in_sz
    use_resident = w_bytes <= weight_resident_bytes

    if use_resident:
        # Conservative VMEM budget (safe on v7x's 64 MiB physical VMEM):
        # double-buffered x tile + weight (2x, conservative) + 2x out tile.
        budget = 40 * 1024 * 1024

        def resident_bytes(tm_):
            return (2 * tm_ * k_pad * in_sz
                    + 2 * k_pad * n_pad_full * in_sz
                    + 2 * tm_ * n_pad_full * out_sz)

        while resident_bytes(tm) > budget and tm > m_mult:
            tm = max(m_mult, _round_up(tm // 2, m_mult))
        if resident_bytes(tm) > budget:
            use_resident = False
        else:
            m_pad = _round_up(batch, tm)

    if use_resident:
        # -------------------- whole-weight-resident path -------------------- #
        n_pad = n_pad_full
        if (m_pad, k_pad) != (batch, nfeats):
            x = jnp.pad(x, ((0, m_pad - batch), (0, k_pad - nfeats)))
        if (k_pad, n_pad) != (nfeats, ncomms):
            w_t = jnp.pad(w_t, ((0, k_pad - nfeats), (0, n_pad - ncomms)))

        out = pl.pallas_call(
            _matmul_block_kernel,
            out_shape=jax.ShapeDtypeStruct((m_pad, n_pad), out_dtype),
            grid_spec=pltpu.PrefetchScalarGridSpec(
                num_scalar_prefetch=0,
                grid=(m_pad // tm,),
                in_specs=[
                    pl.BlockSpec((tm, k_pad), lambda i: (i, 0)),      # x tile
                    pl.BlockSpec((k_pad, n_pad), lambda i: (0, 0)),   # weight resident
                ],
                out_specs=pl.BlockSpec((tm, n_pad), lambda i: (i, 0)),
            ),
            compiler_params=pltpu.CompilerParams(
                dimension_semantics=("parallel",),
                vmem_limit_bytes=vmem_limit_bytes,
            ),
        )(x, w_t)
    else:
        # --------------------------- tiled path ------------------------------ #
        tn = max(128, _round_up(min(tn, n_pad_full), 128))
        tk = max(128, _round_up(min(tk, k_pad), 128))
        n_pad = _round_up(ncomms, tn)
        k_pad = _round_up(nfeats, tk)

        # Zero padding is exact for a matmul.
        # TODO(synk): for very large ragged-K x, mask the tail K tile in-kernel
        # instead of paying a full jnp.pad pass over x.
        if (m_pad, k_pad) != (batch, nfeats):
            x = jnp.pad(x, ((0, m_pad - batch), (0, k_pad - nfeats)))
        if (k_pad, n_pad) != (nfeats, ncomms):
            w_t = jnp.pad(w_t, ((0, k_pad - nfeats), (0, n_pad - ncomms)))

        k_steps = k_pad // tk
        grid = (m_pad // tm, n_pad // tn, k_steps)

        if k_steps == 1:
            # Single K step: write the dot straight to the output, no scratch.
            kernel = _matmul_block_kernel

            def kernel3(x_ref, w_ref, o_ref):
                kernel(x_ref, w_ref, o_ref)

            body = kernel3
            scratch = []
        else:
            body = _matmul_acc_kernel
            scratch = [pltpu.VMEM((tm, tn), jnp.float32)]

        out = pl.pallas_call(
            body,
            out_shape=jax.ShapeDtypeStruct((m_pad, n_pad), out_dtype),
            grid_spec=pltpu.PrefetchScalarGridSpec(
                num_scalar_prefetch=0,
                grid=grid,
                in_specs=[
                    pl.BlockSpec((tm, tk), lambda i, j, k: (i, k)),   # x tile
                    pl.BlockSpec((tk, tn), lambda i, j, k: (k, j)),   # weight.T tile
                ],
                out_specs=pl.BlockSpec((tm, tn), lambda i, j, k: (i, j)),
                scratch_shapes=scratch,
            ),
            compiler_params=pltpu.CompilerParams(
                dimension_semantics=("parallel", "parallel", "arbitrary"),
                vmem_limit_bytes=vmem_limit_bytes,
            ),
        )(x, w_t)

    if (m_pad, n_pad) != (batch, ncomms):
        out = out[:batch, :ncomms]
    return out


if __name__ == "__main__":
    key = jax.random.PRNGKey(0)
    kx, kw, kx2, kw2, kx3, kw3 = jax.random.split(key, 6)

    # --- Small shapes matching the module (batch=8, nfeats=32, ncomms=16) ---
    batch, nfeats, ncomms = 8, 32, 16
    x = jax.random.normal(kx, (batch, nfeats), dtype=jnp.float32)
    bound = 1.0 / (nfeats ** 0.5)  # nn.Linear default init range
    weight = jax.random.uniform(
        kw, (ncomms, nfeats), dtype=jnp.float32, minval=-bound, maxval=bound
    )

    y_ref = x @ weight.T

    # Default: exact input-dtype (f32) semantics, whole-weight-resident path.
    y = perceptron_forward(x, weight)
    jax.block_until_ready(y)
    assert y.shape == (batch, ncomms)
    assert y.dtype == x.dtype
    assert jnp.allclose(y, y_ref, atol=1e-5, rtol=1e-5)

    # bf16 compute path (operands cast in the wrapper; f32 accumulation).
    y_bf16 = perceptron_forward(x, weight, compute_dtype=jnp.bfloat16)
    jax.block_until_ready(y_bf16)
    assert y_bf16.dtype == x.dtype
    assert jnp.allclose(y_bf16, y_ref, atol=2e-2, rtol=2e-2)

    # --- Resident path with a multi-M grid ---
    b2, f2, c2 = 64, 128, 128
    x2 = jax.random.normal(kx2, (b2, f2), dtype=jnp.float32)
    w2 = jax.random.normal(kw2, (c2, f2), dtype=jnp.float32) * (1.0 / (f2 ** 0.5))
    y2 = perceptron_forward(x2, w2, tm=16)
    jax.block_until_ready(y2)
    assert jnp.allclose(y2, x2 @ w2.T, atol=1e-4, rtol=1e-4)

    # --- Force the tiled path to exercise the M/N/K grid + K accumulation ---
    b3, f3, c3 = 32, 256, 256
    x3 = jax.random.normal(kx3, (b3, f3), dtype=jnp.float32)
    w3 = jax.random.normal(kw3, (c3, f3), dtype=jnp.float32) * (1.0 / (f3 ** 0.5))
    y3 = perceptron_forward(
        x3, w3, tm=16, tn=128, tk=128, weight_resident_bytes=0
    )
    jax.block_until_ready(y3)
    assert jnp.allclose(y3, x3 @ w3.T, atol=1e-4, rtol=1e-4)

    print("KERNEL_OK")
</pallas_src>

<mosaic_0001>
module attributes {stable_mosaic.version = 11 : i64} {
  func.func @_matmul_block_kernel(%arg0: i32, %arg1: memref<8x128xf32, #tpu.memory_space<vmem>>, %arg2: memref<128x128xf32, #tpu.memory_space<vmem>>, %arg3: memref<8x128xf32, #tpu.memory_space<vmem>>) attributes {dimension_semantics = [#tpu.dimension_semantics<parallel>], iteration_bounds = array<i64: 1>, scalar_prefetch = 0 : i64, scratch_operands = 0 : i64, tpu.core_type = #tpu.core_type<tc>, window_params = [{transform_indices = @transform_0, window_bounds = array<i64: 8, 128>}, {pipeline_mode = #tpu.pipeline_mode<synchronous>, transform_indices = @transform_1, window_bounds = array<i64: 128, 128>}, {transform_indices = @transform_2, window_bounds = array<i64: 8, 128>}]} {
    %c0 = arith.constant 0 : index
    %c0_0 = arith.constant 0 : index
    %0 = vector.load %arg1[%c0, %c0_0] : memref<8x128xf32, #tpu.memory_space<vmem>>, vector<8x128xf32>
    %c0_1 = arith.constant 0 : index
    %c0_2 = arith.constant 0 : index
    %1 = vector.load %arg2[%c0_1, %c0_2] : memref<128x128xf32, #tpu.memory_space<vmem>>, vector<128x128xf32>
    %cst = arith.constant dense<0.000000e+00> : vector<8x128xf32>
    %2 = tpu.matmul %0, %1, %cst {dimension_numbers = #tpu.dot_dimension_numbers<[1], [0], [0], [1], [0, 0, 1, 1], [], []>} : vector<8x128xf32>, vector<128x128xf32>, vector<8x128xf32> -> vector<8x128xf32>
    %c0_3 = arith.constant 0 : index
    %c0_4 = arith.constant 0 : index
    %3 = vector.load %arg3[%c0_3, %c0_4] : memref<8x128xf32, #tpu.memory_space<vmem>>, vector<8x128xf32>
    tpu.vector_store %arg3[%c0_3, %c0_4], %2 {strides = array<i32>} : memref<8x128xf32, #tpu.memory_space<vmem>>, vector<8x128xf32>,
    return
  }
  func.func @transform_0(%arg0: i32) -> (i32, i32) {
    %c0_i32 = arith.constant 0 : i32
    %c0_i32_0 = arith.constant 0 : i32
    return %arg0, %c0_i32 : i32, i32
  }
  func.func @transform_1(%arg0: i32) -> (i32, i32) {
    %c0_i32 = arith.constant 0 : i32
    %c0_i32_0 = arith.constant 0 : i32
    %c0_i32_1 = arith.constant 0 : i32
    return %c0_i32, %c0_i32_0 : i32, i32
  }
  func.func @transform_2(%arg0: i32) -> (i32, i32) {
    %c0_i32 = arith.constant 0 : i32
    %c0_i32_0 = arith.constant 0 : i32
    return %arg0, %c0_i32 : i32, i32
  }
}

</mosaic_0001>

<bundles_post_ra>
// kernel: tpu_custom_call.1
= control target key start
LH: loop header
LB: loop body
LE: loop exit
PB: predicated region body
PF: predicated region fallthrough
CT: control target
= control target key end

     0   :  { %7 = vsyncpa [#allocation3], 0  ;;  %s210_s0 = inlined_call_operand.hbm [shape: f32[8,128], index: 0, kind: input, shape index: {}]   ;;  %s211_s1 = inlined_call_operand.hbm [shape: f32[128,128], index: 1, kind: input, shape index: {}]   ;;  %s212_s2 = inlined_call_operand.hbm [shape: f32[8,128], index: 2, kind: output, shape index: {}]  }
   0x1   :  { %8 = vsyncpa [#allocation6], 0 }
   0x2   :  { %9 = vsyncpa [#allocation4], 0  ;;  %s15_s11 = sshll.u32 %s210_s0, 4  ;;  %s181_s12 = smov [#allocation2]   ;;  %s16_s11 = int_to_ptr.hbm [resolvable:$true] %s15_s11 }
   0x3   :  { %s17_s13 = sshll.u32 %s181_s12, 4  ;;  %s25_s16 = sshll.u32 %s211_s1, 4  ;;  %s18_s13 = int_to_ptr.vmem [resolvable:$true] %s17_s13  ;;  %s26_s16 = int_to_ptr.hbm [resolvable:$true] %s25_s16 }
   0x4   :  { %20 = dma.hbm_to_vmem [thread:$0]  %s16_s11, 128, %s18_s13, [#allocation3]  }
   0x5   :  { %s182_s17 = smov [#allocation5]   ;;  %s183_s19 = smov 128  }
   0x6   :  { %s27_s18 = sshll.u32 %s182_s17, 4  ;;  %s184_s20 = smov 8   ;;  %s28_s18 = int_to_ptr.vmem [resolvable:$true] %s27_s18 }
   0x7   :  { %33 = dma.hbm_to_vmem [thread:$0]  %s26_s16, 2048, %s28_s18, [#allocation6], %s183_s19, %s183_s19, %s184_s20  }
   0x8   :  { %175 = dma.done.wait [#allocation3], 128  }
   0x9   :  { %176 = vsyncadd [#allocation3], 4294967168 }
   0xa   :  { %177 = dma.done.wait [#allocation6], 2048  }
   0xb   :  { %178 = vsyncadd [#allocation6], 4294965248  ;;  %v58_v0 = vld [vmem:[#allocation5 + $0x78] sm:$0xff]  ;;  %v57_v1 = vld [vmem:[#allocation5 + $0x70] sm:$0xff]  ;;  %s185_s0 = smov [#allocation7]   ;;  %s87_s23 = sshll.u32 %s212_s2, 4  ;;  %s88_s23 = int_to_ptr.hbm [resolvable:$true] %s87_s23 }
   0xc   :  { %59 = vmatpush.msra.mxu0 %v58_v0  ;;  %v56_v2 = vld [vmem:[#allocation5 + $0x68] sm:$0xff]  ;;  %v55_v3 = vld [vmem:[#allocation5 + $0x60] sm:$0xff]  ;;  %v54_v4 = vld [vmem:[#allocation5 + $0x58] sm:$0xff]  ;;  %s85_s1 = sshll.u32 %s185_s0, 4  ;;  %s86_s1 = int_to_ptr.vmem [resolvable:$true] %s85_s1 }
   0xd   :  { %v53_v5 = vld [vmem:[#allocation5 + $0x50] sm:$0xff]  ;;  %v52_v6 = vld [vmem:[#allocation5 + $0x48] sm:$0xff]  ;;  %v51_v7 = vld [vmem:[#allocation5 + $0x40] sm:$0xff] }
   0xe   :  { %60 = vmatpush.msra.mxu0 %v57_v1  ;;  %v50_v8 = vld [vmem:[#allocation5 + $0x38] sm:$0xff]  ;;  %v49_v9 = vld [vmem:[#allocation5 + $0x30] sm:$0xff]  ;;  %v48_v10 = vld [vmem:[#allocation5 + $0x28] sm:$0xff] }
   0xf   :  { %v47_v11 = vld [vmem:[#allocation5 + $0x20] sm:$0xff]  ;;  %v46_v12 = vld [vmem:[#allocation5 + $0x18] sm:$0xff]  ;;  %v45_v13 = vld [vmem:[#allocation5 + $0x10] sm:$0xff] }
  0x10   :  { %61 = vmatpush.msra.mxu0 %v56_v2  ;;  %v44_v14 = vld [vmem:[#allocation5 + $0x8] sm:$0xff]  ;;  %v43_v15 = vld [vmem:[#allocation5] sm:$0xff]  ;;  %v42_v16 = vld [vmem:[#allocation2] sm:$0xff] }
  0x12   :  { %62 = vmatpush.msra.mxu0 %v55_v3 }
  0x14   :  { %63 = vmatpush.msra.mxu0 %v54_v4 }
  0x16   :  { %64 = vmatpush.msra.mxu0 %v53_v5 }
  0x18   :  { %65 = vmatpush.msra.mxu0 %v52_v6 }
  0x1a   :  { %66 = vmatpush.msra.mxu0 %v51_v7 }
  0x1c   :  { %67 = vmatpush.msra.mxu0 %v50_v8 }
  0x1e   :  { %68 = vmatpush.msra.mxu0 %v49_v9 }
  0x20   :  { %69 = vmatpush.msra.mxu0 %v48_v10 }
  0x22   :  { %70 = vmatpush.msra.mxu0 %v47_v11 }
  0x24   :  { %71 = vmatpush.msra.mxu0 %v46_v12 }
  0x26   :  { %72 = vmatpush.msra.mxu0 %v45_v13 }
  0x28   :  { %73 = vmatpush.msra.mxu0 %v44_v14 }
  0x2a   :  { %74 = vmatpush.msra.mxu0 %v43_v15 }
  0x2b   :  { %75 = vmatmul.f32.vlgmr.msra.gmra.mxu0 %v42_v16 }
  0xa8   :  { %v76_v17 = vpop.f32.mrf.mxu0 }
  0xa9   :  { %79 = vst [vmem:[#allocation7] sm:$0xff] %v76_v17 }
  0xaa   :  { %90 = dma.vmem_to_hbm [thread:$0]  %s86_s1, 128, %s88_s23, [#allocation4]  }
  0xab   :  { %179 = dma.done.wait [#allocation4], 128  }
  0xac   :  { %180 = vsyncadd [#allocation4], 4294967168 }
  0xad   :  { %95 = vsyncpa [#allocation3], 1 }
  0xae   :  { %96 = vsyncpa [#allocation6], 1 }
  0xaf   :  { %97 = vsyncpa [#allocation4], 1 }

</bundles_post_ra>
